<compile_context>
chip_gen: v6e
topology: v6e:2x2x1
jax: 0.10.0
libtpu: 0.0.40
codegen_flags: <defaults>
</compile_context>

<pallas_src>
import math
import numpy as np
import jax
import jax.numpy as jnp
from jax.experimental import pallas as pl
from jax.experimental.pallas import tpu as pltpu


def _make_kernel(block_b, seq_len, d_model, heads):
    d_k = d_model // heads
    inv_sqrt_dk = 1.0 / math.sqrt(d_k)
    M = block_b * seq_len

    def kernel(q_ref, k_ref, v_ref, w_ref, b_ref, o_ref):
        f32 = jnp.float32
        # (block_b, S, D) -> (block_b*S, D): merges leading dims only (free relayout).
        xq = q_ref[...].reshape(M, d_model)
        xk = k_ref[...].reshape(M, d_model)
        xv = v_ref[...].reshape(M, d_model)

        # Batched projections: one MXU matmul per projection with M = block_b*S rows.
        # w_ref/b_ref are packed stacks [Wq, Wk, Wv, Wo]; static leading-index Ref
        # reads are free.
        Q = jnp.dot(xq, w_ref[0], preferred_element_type=f32) + b_ref[0]
        K = jnp.dot(xk, w_ref[1], preferred_element_type=f32) + b_ref[1]
        V = jnp.dot(xv, w_ref[2], preferred_element_type=f32) + b_ref[2]

        per_sample = []
        for bb in range(block_b):                 # static, small batch tile
            r0 = bb * seq_len
            head_outs = []
            for h in range(heads):                # static head loop
                c0 = h * d_k
                qh = Q[r0:r0 + seq_len, c0:c0 + d_k]
                kh = K[r0:r0 + seq_len, c0:c0 + d_k]
                vh = V[r0:r0 + seq_len, c0:c0 + d_k]
                sc = jnp.dot(qh, kh.T, preferred_element_type=f32) * f32(inv_sqrt_dk)
                sc = sc - jnp.max(sc, axis=-1, keepdims=True)     # stable softmax
                e = jnp.exp(sc)
                p = e / jnp.sum(e, axis=-1, keepdims=True)
                head_outs.append(jnp.dot(p, vh, preferred_element_type=f32))
            # lane-concat of the H head outputs -> (S, D)
            per_sample.append(jnp.concatenate(head_outs, axis=-1))

        concat = per_sample[0] if block_b == 1 else jnp.concatenate(per_sample, axis=0)
        # Single output projection over the whole (M, D) slab.
        out = jnp.dot(concat, w_ref[3], preferred_element_type=f32) + b_ref[3]
        o_ref[...] = out.reshape(block_b, seq_len, d_model)

    return kernel


def _pick_block_b(batch):
    """Largest batch tile that still leaves >=2 grid steps (so v7x's 2 TCs get work)."""
    if batch <= 1:
        return 1
    target = max(1, batch // 2)
    for bb in range(target, 0, -1):
        if batch % bb == 0:
            return bb
    return 1


def multi_head_attention(q, k, v, params, heads, block_b=None):
    B, S, D = q.shape
    assert k.shape == (B, S, D) and v.shape == (B, S, D)
    assert D % heads == 0
    if block_b is None:
        block_b = _pick_block_b(B)
    assert B % block_b == 0

    # Pack the four projection weights / biases into single stacked operands.
    w = jnp.stack([params["wq"], params["wk"], params["wv"], params["wo"]], axis=0)
    b = jnp.stack([params["bq"], params["bk"], params["bv"], params["bo"]], axis=0)
    b = b[:, None, :]                                           # (4, 1, D)

    kernel = _make_kernel(block_b, S, D, heads)
    xspec = pl.BlockSpec((block_b, S, D), lambda i: (i, 0, 0))

    return pl.pallas_call(
        kernel,
        grid=(B // block_b,),
        in_specs=[
            xspec,                                              # q
            xspec,                                              # k
            xspec,                                              # v
            pl.BlockSpec((4, D, D), lambda i: (0, 0, 0)),       # packed weights
            pl.BlockSpec((4, 1, D), lambda i: (0, 0, 0)),       # packed biases
        ],
        out_specs=xspec,
        out_shape=jax.ShapeDtypeStruct((B, S, D), jnp.float32),
        compiler_params=pltpu.CompilerParams(dimension_semantics=("parallel",)),
    )(q, k, v, w, b)


def init_params(key, d_model):
    keys = jax.random.split(key, 8)
    bound = 1.0 / math.sqrt(d_model)

    def lin(kw, kb):
        w = jax.random.uniform(kw, (d_model, d_model), jnp.float32, -bound, bound)
        bb = jax.random.uniform(kb, (d_model,), jnp.float32, -bound, bound)
        return w, bb

    wq, bq = lin(keys[0], keys[1])
    wk, bk = lin(keys[2], keys[3])
    wv, bv = lin(keys[4], keys[5])
    wo, bo = lin(keys[6], keys[7])
    return dict(wq=wq, bq=bq, wk=wk, bk=bk, wv=wv, bv=bv, wo=wo, bo=bo)


def reference_mha(q, k, v, params, heads):
    """Pure-JAX mirror of the PyTorch MultiHeadAttention.forward (mask=None)."""
    B, S, D = q.shape
    d_k = D // heads
    P = jax.lax.Precision.HIGHEST
    Q = jnp.einsum("bsd,de->bse", q, params["wq"], precision=P) + params["bq"]
    K = jnp.einsum("bsd,de->bse", k, params["wk"], precision=P) + params["bk"]
    V = jnp.einsum("bsd,de->bse", v, params["wv"], precision=P) + params["bv"]
    Qh = Q.reshape(B, S, heads, d_k).transpose(0, 2, 1, 3)
    Kh = K.reshape(B, S, heads, d_k).transpose(0, 2, 1, 3)
    Vh = V.reshape(B, S, heads, d_k).transpose(0, 2, 1, 3)
    sc = jnp.einsum("bhsd,bhtd->bhst", Qh, Kh, precision=P) / math.sqrt(d_k)
    p = jax.nn.softmax(sc, axis=-1)
    o = jnp.einsum("bhst,bhtd->bhsd", p, Vh, precision=P)
    concat = o.transpose(0, 2, 1, 3).reshape(B, S, D)
    return jnp.einsum("bsd,de->bse", concat, params["wo"], precision=P) + params["bo"]


if __name__ == "__main__":
    heads, d_model, seq_len, batch = 4, 32, 8, 4
    key = jax.random.PRNGKey(0)
    kq, kk, kv, kp = jax.random.split(key, 4)
    q = jax.random.normal(kq, (batch, seq_len, d_model), jnp.float32)
    k = jax.random.normal(kk, (batch, seq_len, d_model), jnp.float32)
    v = jax.random.normal(kv, (batch, seq_len, d_model), jnp.float32)
    params = init_params(kp, d_model)

    out = jax.block_until_ready(multi_head_attention(q, k, v, params, heads))
    assert out.shape == (batch, seq_len, d_model)

    ref = jax.block_until_ready(reference_mha(q, k, v, params, heads))
    np.testing.assert_allclose(np.asarray(out), np.asarray(ref), rtol=1e-4, atol=1e-4)

    print("KERNEL_OK")
</pallas_src>

<mosaic_0001>
module attributes {stable_mosaic.version = 11 : i64} {
  func.func @kernel(%arg0: i32, %arg1: memref<2x8x32xf32, #tpu.memory_space<vmem>>, %arg2: memref<2x8x32xf32, #tpu.memory_space<vmem>>, %arg3: memref<2x8x32xf32, #tpu.memory_space<vmem>>, %arg4: memref<4x32x32xf32, #tpu.memory_space<vmem>>, %arg5: memref<4x1x32xf32, #tpu.memory_space<vmem>>, %arg6: memref<2x8x32xf32, #tpu.memory_space<vmem>>) attributes {dimension_semantics = [#tpu.dimension_semantics<parallel>], iteration_bounds = array<i64: 2>, scalar_prefetch = 0 : i64, scratch_operands = 0 : i64, tpu.core_type = #tpu.core_type<tc>, window_params = [{transform_indices = @transform_0, window_bounds = array<i64: 2, 8, 32>}, {transform_indices = @transform_1, window_bounds = array<i64: 2, 8, 32>}, {transform_indices = @transform_2, window_bounds = array<i64: 2, 8, 32>}, {pipeline_mode = #tpu.pipeline_mode<synchronous>, transform_indices = @transform_3, window_bounds = array<i64: 4, 32, 32>}, {pipeline_mode = #tpu.pipeline_mode<synchronous>, transform_indices = @transform_4, window_bounds = array<i64: 4, 1, 32>}, {transform_indices = @transform_5, window_bounds = array<i64: 2, 8, 32>}]} {
    %c0 = arith.constant 0 : index
    %c0_0 = arith.constant 0 : index
    %c0_1 = arith.constant 0 : index
    %0 = vector.load %arg1[%c0, %c0_0, %c0_1] : memref<2x8x32xf32, #tpu.memory_space<vmem>>, vector<2x8x32xf32>
    %1 = vector.shape_cast %0 : vector<2x8x32xf32> to vector<16x32xf32>
    %c0_2 = arith.constant 0 : index
    %c0_3 = arith.constant 0 : index
    %c0_4 = arith.constant 0 : index
    %2 = vector.load %arg2[%c0_2, %c0_3, %c0_4] : memref<2x8x32xf32, #tpu.memory_space<vmem>>, vector<2x8x32xf32>
    %3 = vector.shape_cast %2 : vector<2x8x32xf32> to vector<16x32xf32>
    %c0_5 = arith.constant 0 : index
    %c0_6 = arith.constant 0 : index
    %c0_7 = arith.constant 0 : index
    %4 = vector.load %arg3[%c0_5, %c0_6, %c0_7] : memref<2x8x32xf32, #tpu.memory_space<vmem>>, vector<2x8x32xf32>
    %5 = vector.shape_cast %4 : vector<2x8x32xf32> to vector<16x32xf32>
    %c0_8 = arith.constant 0 : index
    %c0_9 = arith.constant 0 : index
    %c0_10 = arith.constant 0 : index
    %6 = vector.load %arg4[%c0_8, %c0_9, %c0_10] : memref<4x32x32xf32, #tpu.memory_space<vmem>>, vector<1x32x32xf32>
    %7 = vector.shape_cast %6 : vector<1x32x32xf32> to vector<32x32xf32>
    %cst = arith.constant dense<0.000000e+00> : vector<16x32xf32>
    %8 = tpu.matmul %1, %7, %cst {dimension_numbers = #tpu.dot_dimension_numbers<[1], [0], [0], [1], [0, 0, 1, 1], [], []>} : vector<16x32xf32>, vector<32x32xf32>, vector<16x32xf32> -> vector<16x32xf32>
    %c0_11 = arith.constant 0 : index
    %c0_12 = arith.constant 0 : index
    %c0_13 = arith.constant 0 : index
    %9 = vector.load %arg5[%c0_11, %c0_12, %c0_13] : memref<4x1x32xf32, #tpu.memory_space<vmem>>, vector<1x1x32xf32>
    %10 = vector.shape_cast %9 : vector<1x1x32xf32> to vector<1x32xf32>
    %11 = vector.broadcast %10 : vector<1x32xf32> to vector<16x32xf32>
    %12 = arith.addf %8, %11 : vector<16x32xf32>
    %c1 = arith.constant 1 : index
    %c0_14 = arith.constant 0 : index
    %c0_15 = arith.constant 0 : index
    %13 = vector.load %arg4[%c1, %c0_14, %c0_15] : memref<4x32x32xf32, #tpu.memory_space<vmem>>, vector<1x32x32xf32>
    %14 = vector.shape_cast %13 : vector<1x32x32xf32> to vector<32x32xf32>
    %cst_16 = arith.constant dense<0.000000e+00> : vector<16x32xf32>
    %15 = tpu.matmul %3, %14, %cst_16 {dimension_numbers = #tpu.dot_dimension_numbers<[1], [0], [0], [1], [0, 0, 1, 1], [], []>} : vector<16x32xf32>, vector<32x32xf32>, vector<16x32xf32> -> vector<16x32xf32>
    %c1_17 = arith.constant 1 : index
    %c0_18 = arith.constant 0 : index
    %c0_19 = arith.constant 0 : index
    %16 = vector.load %arg5[%c1_17, %c0_18, %c0_19] : memref<4x1x32xf32, #tpu.memory_space<vmem>>, vector<1x1x32xf32>
    %17 = vector.shape_cast %16 : vector<1x1x32xf32> to vector<1x32xf32>
    %18 = vector.broadcast %17 : vector<1x32xf32> to vector<16x32xf32>
    %19 = arith.addf %15, %18 : vector<16x32xf32>
    %c2 = arith.constant 2 : index
    %c0_20 = arith.constant 0 : index
    %c0_21 = arith.constant 0 : index
    %20 = vector.load %arg4[%c2, %c0_20, %c0_21] : memref<4x32x32xf32, #tpu.memory_space<vmem>>, vector<1x32x32xf32>
    %21 = vector.shape_cast %20 : vector<1x32x32xf32> to vector<32x32xf32>
    %cst_22 = arith.constant dense<0.000000e+00> : vector<16x32xf32>
    %22 = tpu.matmul %5, %21, %cst_22 {dimension_numbers = #tpu.dot_dimension_numbers<[1], [0], [0], [1], [0, 0, 1, 1], [], []>} : vector<16x32xf32>, vector<32x32xf32>, vector<16x32xf32> -> vector<16x32xf32>
    %c2_23 = arith.constant 2 : index
    %c0_24 = arith.constant 0 : index
    %c0_25 = arith.constant 0 : index
    %23 = vector.load %arg5[%c2_23, %c0_24, %c0_25] : memref<4x1x32xf32, #tpu.memory_space<vmem>>, vector<1x1x32xf32>
    %24 = vector.shape_cast %23 : vector<1x1x32xf32> to vector<1x32xf32>
    %25 = vector.broadcast %24 : vector<1x32xf32> to vector<16x32xf32>
    %26 = arith.addf %22, %25 : vector<16x32xf32>
    %27 = vector.extract_strided_slice %12 {offsets = [0, 0], sizes = [8, 8], strides = [1, 1]} : vector<16x32xf32> to vector<8x8xf32>
    %28 = vector.extract_strided_slice %19 {offsets = [0, 0], sizes = [8, 8], strides = [1, 1]} : vector<16x32xf32> to vector<8x8xf32>
    %29 = vector.extract_strided_slice %26 {offsets = [0, 0], sizes = [8, 8], strides = [1, 1]} : vector<16x32xf32> to vector<8x8xf32>
    %30 = tpu.transpose %28, [1, 0] : vector<8x8xf32> -> vector<8x8xf32>
    %cst_26 = arith.constant dense<0.000000e+00> : vector<8x8xf32>
    %31 = tpu.matmul %27, %30, %cst_26 {dimension_numbers = #tpu.dot_dimension_numbers<[1], [0], [0], [1], [0, 0, 1, 1], [], []>} : vector<8x8xf32>, vector<8x8xf32>, vector<8x8xf32> -> vector<8x8xf32>
    %cst_27 = arith.constant 0.353553385 : f32
    %32 = vector.broadcast %cst_27 : f32 to vector<8x8xf32>
    %33 = arith.mulf %31, %32 : vector<8x8xf32>
    %cst_28 = arith.constant dense<0xFF800000> : vector<8xf32>
    %34 = vector.multi_reduction <maximumf>, %33, %cst_28 [1] : vector<8x8xf32> to vector<8xf32>
    %35 = vector.shape_cast %34 : vector<8xf32> to vector<8x1xf32>
    %36 = vector.broadcast %35 : vector<8x1xf32> to vector<8x8xf32>
    %37 = arith.subf %33, %36 : vector<8x8xf32>
    %38 = math.exp %37 : vector<8x8xf32>
    %cst_29 = arith.constant dense<0.000000e+00> : vector<8xf32>
    %39 = vector.multi_reduction <add>, %38, %cst_29 [1] : vector<8x8xf32> to vector<8xf32>
    %40 = vector.shape_cast %39 : vector<8xf32> to vector<8x1xf32>
    %41 = vector.broadcast %40 : vector<8x1xf32> to vector<8x8xf32>
    %42 = arith.divf %38, %41 : vector<8x8xf32>
    %cst_30 = arith.constant dense<0.000000e+00> : vector<8x8xf32>
    %43 = tpu.matmul %42, %29, %cst_30 {dimension_numbers = #tpu.dot_dimension_numbers<[1], [0], [0], [1], [0, 0, 1, 1], [], []>} : vector<8x8xf32>, vector<8x8xf32>, vector<8x8xf32> -> vector<8x8xf32>
    %44 = vector.extract_strided_slice %12 {offsets = [0, 8], sizes = [8, 8], strides = [1, 1]} : vector<16x32xf32> to vector<8x8xf32>
    %45 = vector.extract_strided_slice %19 {offsets = [0, 8], sizes = [8, 8], strides = [1, 1]} : vector<16x32xf32> to vector<8x8xf32>
    %46 = vector.extract_strided_slice %26 {offsets = [0, 8], sizes = [8, 8], strides = [1, 1]} : vector<16x32xf32> to vector<8x8xf32>
    %47 = tpu.transpose %45, [1, 0] : vector<8x8xf32> -> vector<8x8xf32>
    %cst_31 = arith.constant dense<0.000000e+00> : vector<8x8xf32>
    %48 = tpu.matmul %44, %47, %cst_31 {dimension_numbers = #tpu.dot_dimension_numbers<[1], [0], [0], [1], [0, 0, 1, 1], [], []>} : vector<8x8xf32>, vector<8x8xf32>, vector<8x8xf32> -> vector<8x8xf32>
    %cst_32 = arith.constant 0.353553385 : f32
    %49 = vector.broadcast %cst_32 : f32 to vector<8x8xf32>
    %50 = arith.mulf %48, %49 : vector<8x8xf32>
    %cst_33 = arith.constant dense<0xFF800000> : vector<8xf32>
    %51 = vector.multi_reduction <maximumf>, %50, %cst_33 [1] : vector<8x8xf32> to vector<8xf32>
    %52 = vector.shape_cast %51 : vector<8xf32> to vector<8x1xf32>
    %53 = vector.broadcast %52 : vector<8x1xf32> to vector<8x8xf32>
    %54 = arith.subf %50, %53 : vector<8x8xf32>
    %55 = math.exp %54 : vector<8x8xf32>
    %cst_34 = arith.constant dense<0.000000e+00> : vector<8xf32>
    %56 = vector.multi_reduction <add>, %55, %cst_34 [1] : vector<8x8xf32> to vector<8xf32>
    %57 = vector.shape_cast %56 : vector<8xf32> to vector<8x1xf32>
    %58 = vector.broadcast %57 : vector<8x1xf32> to vector<8x8xf32>
    %59 = arith.divf %55, %58 : vector<8x8xf32>
    %cst_35 = arith.constant dense<0.000000e+00> : vector<8x8xf32>
    %60 = tpu.matmul %59, %46, %cst_35 {dimension_numbers = #tpu.dot_dimension_numbers<[1], [0], [0], [1], [0, 0, 1, 1], [], []>} : vector<8x8xf32>, vector<8x8xf32>, vector<8x8xf32> -> vector<8x8xf32>
    %61 = vector.extract_strided_slice %12 {offsets = [0, 16], sizes = [8, 8], strides = [1, 1]} : vector<16x32xf32> to vector<8x8xf32>
    %62 = vector.extract_strided_slice %19 {offsets = [0, 16], sizes = [8, 8], strides = [1, 1]} : vector<16x32xf32> to vector<8x8xf32>
    %63 = vector.extract_strided_slice %26 {offsets = [0, 16], sizes = [8, 8], strides = [1, 1]} : vector<16x32xf32> to vector<8x8xf32>
    %64 = tpu.transpose %62, [1, 0] : vector<8x8xf32> -> vector<8x8xf32>
    %cst_36 = arith.constant dense<0.000000e+00> : vector<8x8xf32>
    %65 = tpu.matmul %61, %64, %cst_36 {dimension_numbers = #tpu.dot_dimension_numbers<[1], [0], [0], [1], [0, 0, 1, 1], [], []>} : vector<8x8xf32>, vector<8x8xf32>, vector<8x8xf32> -> vector<8x8xf32>
    %cst_37 = arith.constant 0.353553385 : f32
    %66 = vector.broadcast %cst_37 : f32 to vector<8x8xf32>
    %67 = arith.mulf %65, %66 : vector<8x8xf32>
    %cst_38 = arith.constant dense<0xFF800000> : vector<8xf32>
    %68 = vector.multi_reduction <maximumf>, %67, %cst_38 [1] : vector<8x8xf32> to vector<8xf32>
    %69 = vector.shape_cast %68 : vector<8xf32> to vector<8x1xf32>
    %70 = vector.broadcast %69 : vector<8x1xf32> to vector<8x8xf32>
    %71 = arith.subf %67, %70 : vector<8x8xf32>
    %72 = math.exp %71 : vector<8x8xf32>
    %cst_39 = arith.constant dense<0.000000e+00> : vector<8xf32>
    %73 = vector.multi_reduction <add>, %72, %cst_39 [1] : vector<8x8xf32> to vector<8xf32>
    %74 = vector.shape_cast %73 : vector<8xf32> to vector<8x1xf32>
    %75 = vector.broadcast %74 : vector<8x1xf32> to vector<8x8xf32>
    %76 = arith.divf %72, %75 : vector<8x8xf32>
    %cst_40 = arith.constant dense<0.000000e+00> : vector<8x8xf32>
    %77 = tpu.matmul %76, %63, %cst_40 {dimension_numbers = #tpu.dot_dimension_numbers<[1], [0], [0], [1], [0, 0, 1, 1], [], []>} : vector<8x8xf32>, vector<8x8xf32>, vector<8x8xf32> -> vector<8x8xf32>
    %78 = vector.extract_strided_slice %12 {offsets = [0, 24], sizes = [8, 8], strides = [1, 1]} : vector<16x32xf32> to vector<8x8xf32>
    %79 = vector.extract_strided_slice %19 {offsets = [0, 24], sizes = [8, 8], strides = [1, 1]} : vector<16x32xf32> to vector<8x8xf32>
    %80 = vector.extract_strided_slice %26 {offsets = [0, 24], sizes = [8, 8], strides = [1, 1]} : vector<16x32xf32> to vector<8x8xf32>
    %81 = tpu.transpose %79, [1, 0] : vector<8x8xf32> -> vector<8x8xf32>
    %cst_41 = arith.constant dense<0.000000e+00> : vector<8x8xf32>
    %82 = tpu.matmul %78, %81, %cst_41 {dimension_numbers = #tpu.dot_dimension_numbers<[1], [0], [0], [1], [0, 0, 1, 1], [], []>} : vector<8x8xf32>, vector<8x8xf32>, vector<8x8xf32> -> vector<8x8xf32>
    %cst_42 = arith.constant 0.353553385 : f32
    %83 = vector.broadcast %cst_42 : f32 to vector<8x8xf32>
    %84 = arith.mulf %82, %83 : vector<8x8xf32>
    %cst_43 = arith.constant dense<0xFF800000> : vector<8xf32>
    %85 = vector.multi_reduction <maximumf>, %84, %cst_43 [1] : vector<8x8xf32> to vector<8xf32>
    %86 = vector.shape_cast %85 : vector<8xf32> to vector<8x1xf32>
    %87 = vector.broadcast %86 : vector<8x1xf32> to vector<8x8xf32>
    %88 = arith.subf %84, %87 : vector<8x8xf32>
    %89 = math.exp %88 : vector<8x8xf32>
    %cst_44 = arith.constant dense<0.000000e+00> : vector<8xf32>
    %90 = vector.multi_reduction <add>, %89, %cst_44 [1] : vector<8x8xf32> to vector<8xf32>
    %91 = vector.shape_cast %90 : vector<8xf32> to vector<8x1xf32>
    %92 = vector.broadcast %91 : vector<8x1xf32> to vector<8x8xf32>
    %93 = arith.divf %89, %92 : vector<8x8xf32>
    %cst_45 = arith.constant dense<0.000000e+00> : vector<8x8xf32>
    %94 = tpu.matmul %93, %80, %cst_45 {dimension_numbers = #tpu.dot_dimension_numbers<[1], [0], [0], [1], [0, 0, 1, 1], [], []>} : vector<8x8xf32>, vector<8x8xf32>, vector<8x8xf32> -> vector<8x8xf32>
    %95 = tpu.concatenate %43, %60, %77, %94 in 1 : vector<8x8xf32>, vector<8x8xf32>, vector<8x8xf32>, vector<8x8xf32> -> vector<8x32xf32>
    %96 = vector.extract_strided_slice %12 {offsets = [8, 0], sizes = [8, 8], strides = [1, 1]} : vector<16x32xf32> to vector<8x8xf32>
    %97 = vector.extract_strided_slice %19 {offsets = [8, 0], sizes = [8, 8], strides = [1, 1]} : vector<16x32xf32> to vector<8x8xf32>
    %98 = vector.extract_strided_slice %26 {offsets = [8, 0], sizes = [8, 8], strides = [1, 1]} : vector<16x32xf32> to vector<8x8xf32>
    %99 = tpu.transpose %97, [1, 0] : vector<8x8xf32> -> vector<8x8xf32>
    %cst_46 = arith.constant dense<0.000000e+00> : vector<8x8xf32>
    %100 = tpu.matmul %96, %99, %cst_46 {dimension_numbers = #tpu.dot_dimension_numbers<[1], [0], [0], [1], [0, 0, 1, 1], [], []>} : vector<8x8xf32>, vector<8x8xf32>, vector<8x8xf32> -> vector<8x8xf32>
    %cst_47 = arith.constant 0.353553385 : f32
    %101 = vector.broadcast %cst_47 : f32 to vector<8x8xf32>
    %102 = arith.mulf %100, %101 : vector<8x8xf32>
    %cst_48 = arith.constant dense<0xFF800000> : vector<8xf32>
    %103 = vector.multi_reduction <maximumf>, %102, %cst_48 [1] : vector<8x8xf32> to vector<8xf32>
    %104 = vector.shape_cast %103 : vector<8xf32> to vector<8x1xf32>
    %105 = vector.broadcast %104 : vector<8x1xf32> to vector<8x8xf32>
    %106 = arith.subf %102, %105 : vector<8x8xf32>
    %107 = math.exp %106 : vector<8x8xf32>
    %cst_49 = arith.constant dense<0.000000e+00> : vector<8xf32>
    %108 = vector.multi_reduction <add>, %107, %cst_49 [1] : vector<8x8xf32> to vector<8xf32>
    %109 = vector.shape_cast %108 : vector<8xf32> to vector<8x1xf32>
    %110 = vector.broadcast %109 : vector<8x1xf32> to vector<8x8xf32>
    %111 = arith.divf %107, %110 : vector<8x8xf32>
    %cst_50 = arith.constant dense<0.000000e+00> : vector<8x8xf32>
    %112 = tpu.matmul %111, %98, %cst_50 {dimension_numbers = #tpu.dot_dimension_numbers<[1], [0], [0], [1], [0, 0, 1, 1], [], []>} : vector<8x8xf32>, vector<8x8xf32>, vector<8x8xf32> -> vector<8x8xf32>
    %113 = vector.extract_strided_slice %12 {offsets = [8, 8], sizes = [8, 8], strides = [1, 1]} : vector<16x32xf32> to vector<8x8xf32>
    %114 = vector.extract_strided_slice %19 {offsets = [8, 8], sizes = [8, 8], strides = [1, 1]} : vector<16x32xf32> to vector<8x8xf32>
    %115 = vector.extract_strided_slice %26 {offsets = [8, 8], sizes = [8, 8], strides = [1, 1]} : vector<16x32xf32> to vector<8x8xf32>
    %116 = tpu.transpose %114, [1, 0] : vector<8x8xf32> -> vector<8x8xf32>
    %cst_51 = arith.constant dense<0.000000e+00> : vector<8x8xf32>
    %117 = tpu.matmul %113, %116, %cst_51 {dimension_numbers = #tpu.dot_dimension_numbers<[1], [0], [0], [1], [0, 0, 1, 1], [], []>} : vector<8x8xf32>, vector<8x8xf32>, vector<8x8xf32> -> vector<8x8xf32>
    %cst_52 = arith.constant 0.353553385 : f32
    %118 = vector.broadcast %cst_52 : f32 to vector<8x8xf32>
    %119 = arith.mulf %117, %118 : vector<8x8xf32>
    %cst_53 = arith.constant dense<0xFF800000> : vector<8xf32>
    %120 = vector.multi_reduction <maximumf>, %119, %cst_53 [1] : vector<8x8xf32> to vector<8xf32>
    %121 = vector.shape_cast %120 : vector<8xf32> to vector<8x1xf32>
    %122 = vector.broadcast %121 : vector<8x1xf32> to vector<8x8xf32>
    %123 = arith.subf %119, %122 : vector<8x8xf32>
    %124 = math.exp %123 : vector<8x8xf32>
    %cst_54 = arith.constant dense<0.000000e+00> : vector<8xf32>
    %125 = vector.multi_reduction <add>, %124, %cst_54 [1] : vector<8x8xf32> to vector<8xf32>
    %126 = vector.shape_cast %125 : vector<8xf32> to vector<8x1xf32>
    %127 = vector.broadcast %126 : vector<8x1xf32> to vector<8x8xf32>
    %128 = arith.divf %124, %127 : vector<8x8xf32>
    %cst_55 = arith.constant dense<0.000000e+00> : vector<8x8xf32>
    %129 = tpu.matmul %128, %115, %cst_55 {dimension_numbers = #tpu.dot_dimension_numbers<[1], [0], [0], [1], [0, 0, 1, 1], [], []>} : vector<8x8xf32>, vector<8x8xf32>, vector<8x8xf32> -> vector<8x8xf32>
    %130 = vector.extract_strided_slice %12 {offsets = [8, 16], sizes = [8, 8], strides = [1, 1]} : vector<16x32xf32> to vector<8x8xf32>
    %131 = vector.extract_strided_slice %19 {offsets = [8, 16], sizes = [8, 8], strides = [1, 1]} : vector<16x32xf32> to vector<8x8xf32>
    %132 = vector.extract_strided_slice %26 {offsets = [8, 16], sizes = [8, 8], strides = [1, 1]} : vector<16x32xf32> to vector<8x8xf32>
    %133 = tpu.transpose %131, [1, 0] : vector<8x8xf32> -> vector<8x8xf32>
    %cst_56 = arith.constant dense<0.000000e+00> : vector<8x8xf32>
    %134 = tpu.matmul %130, %133, %cst_56 {dimension_numbers = #tpu.dot_dimension_numbers<[1], [0], [0], [1], [0, 0, 1, 1], [], []>} : vector<8x8xf32>, vector<8x8xf32>, vector<8x8xf32> -> vector<8x8xf32>
    %cst_57 = arith.constant 0.353553385 : f32
    %135 = vector.broadcast %cst_57 : f32 to vector<8x8xf32>
    %136 = arith.mulf %134, %135 : vector<8x8xf32>
    %cst_58 = arith.constant dense<0xFF800000> : vector<8xf32>
    %137 = vector.multi_reduction <maximumf>, %136, %cst_58 [1] : vector<8x8xf32> to vector<8xf32>
    %138 = vector.shape_cast %137 : vector<8xf32> to vector<8x1xf32>
    %139 = vector.broadcast %138 : vector<8x1xf32> to vector<8x8xf32>
    %140 = arith.subf %136, %139 : vector<8x8xf32>
    %141 = math.exp %140 : vector<8x8xf32>
    %cst_59 = arith.constant dense<0.000000e+00> : vector<8xf32>
    %142 = vector.multi_reduction <add>, %141, %cst_59 [1] : vector<8x8xf32> to vector<8xf32>
    %143 = vector.shape_cast %142 : vector<8xf32> to vector<8x1xf32>
    %144 = vector.broadcast %143 : vector<8x1xf32> to vector<8x8xf32>
    %145 = arith.divf %141, %144 : vector<8x8xf32>
    %cst_60 = arith.constant dense<0.000000e+00> : vector<8x8xf32>
    %146 = tpu.matmul %145, %132, %cst_60 {dimension_numbers = #tpu.dot_dimension_numbers<[1], [0], [0], [1], [0, 0, 1, 1], [], []>} : vector<8x8xf32>, vector<8x8xf32>, vector<8x8xf32> -> vector<8x8xf32>
    %147 = vector.extract_strided_slice %12 {offsets = [8, 24], sizes = [8, 8], strides = [1, 1]} : vector<16x32xf32> to vector<8x8xf32>
    %148 = vector.extract_strided_slice %19 {offsets = [8, 24], sizes = [8, 8], strides = [1, 1]} : vector<16x32xf32> to vector<8x8xf32>
    %149 = vector.extract_strided_slice %26 {offsets = [8, 24], sizes = [8, 8], strides = [1, 1]} : vector<16x32xf32> to vector<8x8xf32>
    %150 = tpu.transpose %148, [1, 0] : vector<8x8xf32> -> vector<8x8xf32>
    %cst_61 = arith.constant dense<0.000000e+00> : vector<8x8xf32>
    %151 = tpu.matmul %147, %150, %cst_61 {dimension_numbers = #tpu.dot_dimension_numbers<[1], [0], [0], [1], [0, 0, 1, 1], [], []>} : vector<8x8xf32>, vector<8x8xf32>, vector<8x8xf32> -> vector<8x8xf32>
    %cst_62 = arith.constant 0.353553385 : f32
    %152 = vector.broadcast %cst_62 : f32 to vector<8x8xf32>
    %153 = arith.mulf %151, %152 : vector<8x8xf32>
    %cst_63 = arith.constant dense<0xFF800000> : vector<8xf32>
    %154 = vector.multi_reduction <maximumf>, %153, %cst_63 [1] : vector<8x8xf32> to vector<8xf32>
    %155 = vector.shape_cast %154 : vector<8xf32> to vector<8x1xf32>
    %156 = vector.broadcast %155 : vector<8x1xf32> to vector<8x8xf32>
    %157 = arith.subf %153, %156 : vector<8x8xf32>
    %158 = math.exp %157 : vector<8x8xf32>
    %cst_64 = arith.constant dense<0.000000e+00> : vector<8xf32>
    %159 = vector.multi_reduction <add>, %158, %cst_64 [1] : vector<8x8xf32> to vector<8xf32>
    %160 = vector.shape_cast %159 : vector<8xf32> to vector<8x1xf32>
    %161 = vector.broadcast %160 : vector<8x1xf32> to vector<8x8xf32>
    %162 = arith.divf %158, %161 : vector<8x8xf32>
    %cst_65 = arith.constant dense<0.000000e+00> : vector<8x8xf32>
    %163 = tpu.matmul %162, %149, %cst_65 {dimension_numbers = #tpu.dot_dimension_numbers<[1], [0], [0], [1], [0, 0, 1, 1], [], []>} : vector<8x8xf32>, vector<8x8xf32>, vector<8x8xf32> -> vector<8x8xf32>
    %164 = tpu.concatenate %112, %129, %146, %163 in 1 : vector<8x8xf32>, vector<8x8xf32>, vector<8x8xf32>, vector<8x8xf32> -> vector<8x32xf32>
    %165 = tpu.concatenate %95, %164 in 0 : vector<8x32xf32>, vector<8x32xf32> -> vector<16x32xf32>
    %c3 = arith.constant 3 : index
    %c0_66 = arith.constant 0 : index
    %c0_67 = arith.constant 0 : index
    %166 = vector.load %arg4[%c3, %c0_66, %c0_67] : memref<4x32x32xf32, #tpu.memory_space<vmem>>, vector<1x32x32xf32>
    %167 = vector.shape_cast %166 : vector<1x32x32xf32> to vector<32x32xf32>
    %cst_68 = arith.constant dense<0.000000e+00> : vector<16x32xf32>
    %168 = tpu.matmul %165, %167, %cst_68 {dimension_numbers = #tpu.dot_dimension_numbers<[1], [0], [0], [1], [0, 0, 1, 1], [], []>} : vector<16x32xf32>, vector<32x32xf32>, vector<16x32xf32> -> vector<16x32xf32>
    %c3_69 = arith.constant 3 : index
    %c0_70 = arith.constant 0 : index
    %c0_71 = arith.constant 0 : index
    %169 = vector.load %arg5[%c3_69, %c0_70, %c0_71] : memref<4x1x32xf32, #tpu.memory_space<vmem>>, vector<1x1x32xf32>
    %170 = vector.shape_cast %169 : vector<1x1x32xf32> to vector<1x32xf32>
    %171 = vector.broadcast %170 : vector<1x32xf32> to vector<16x32xf32>
    %172 = arith.addf %168, %171 : vector<16x32xf32>
    %173 = vector.shape_cast %172 : vector<16x32xf32> to vector<2x8x32xf32>
    %c0_72 = arith.constant 0 : index
    %c0_73 = arith.constant 0 : index
    %c0_74 = arith.constant 0 : index
    %174 = vector.load %arg6[%c0_72, %c0_73, %c0_74] : memref<2x8x32xf32, #tpu.memory_space<vmem>>, vector<2x8x32xf32>
    tpu.vector_store %arg6[%c0_72, %c0_73, %c0_74], %173 {strides = array<i32>} : memref<2x8x32xf32, #tpu.memory_space<vmem>>, vector<2x8x32xf32>,
    return
  }
  func.func @transform_0(%arg0: i32) -> (i32, i32, i32) {
    %c0_i32 = arith.constant 0 : i32
    %c0_i32_0 = arith.constant 0 : i32
    %c0_i32_1 = arith.constant 0 : i32
    return %arg0, %c0_i32, %c0_i32_0 : i32, i32, i32
  }
  func.func @transform_1(%arg0: i32) -> (i32, i32, i32) {
    %c0_i32 = arith.constant 0 : i32
    %c0_i32_0 = arith.constant 0 : i32
    %c0_i32_1 = arith.constant 0 : i32
    return %arg0, %c0_i32, %c0_i32_0 : i32, i32, i32
  }
  func.func @transform_2(%arg0: i32) -> (i32, i32, i32) {
    %c0_i32 = arith.constant 0 : i32
    %c0_i32_0 = arith.constant 0 : i32
    %c0_i32_1 = arith.constant 0 : i32
    return %arg0, %c0_i32, %c0_i32_0 : i32, i32, i32
  }
  func.func @transform_3(%arg0: i32) -> (i32, i32, i32) {
    %c0_i32 = arith.constant 0 : i32
    %c0_i32_0 = arith.constant 0 : i32
    %c0_i32_1 = arith.constant 0 : i32
    %c0_i32_2 = arith.constant 0 : i32
    return %c0_i32, %c0_i32_0, %c0_i32_1 : i32, i32, i32
  }
  func.func @transform_4(%arg0: i32) -> (i32, i32, i32) {
    %c0_i32 = arith.constant 0 : i32
    %c0_i32_0 = arith.constant 0 : i32
    %c0_i32_1 = arith.constant 0 : i32
    %c0_i32_2 = arith.constant 0 : i32
    return %c0_i32, %c0_i32_0, %c0_i32_1 : i32, i32, i32
  }
  func.func @transform_5(%arg0: i32) -> (i32, i32, i32) {
    %c0_i32 = arith.constant 0 : i32
    %c0_i32_0 = arith.constant 0 : i32
    %c0_i32_1 = arith.constant 0 : i32
    return %arg0, %c0_i32, %c0_i32_0 : i32, i32, i32
  }
}

</mosaic_0001>

<bundles_post_ra>
// kernel: tpu_custom_call.1
= control target key start
LH: loop header
LB: loop body
LE: loop exit
PB: predicated region body
PF: predicated region fallthrough
CT: control target
= control target key end

     0   :  { %s3281_s0 = inlined_call_operand.hbm [shape: f32[4,8,32], index: 0, kind: input, shape index: {}]   ;;  %s3282_s1 = inlined_call_operand.hbm [shape: f32[4,8,32], index: 1, kind: input, shape index: {}]   ;;  %s3283_s2 = inlined_call_operand.hbm [shape: f32[4,8,32], index: 2, kind: input, shape index: {}]   ;;  %s3284_s3 = inlined_call_operand.hbm [shape: f32[4,32,32], index: 3, kind: input, shape index: {}]   ;;  %s3285_s4 = inlined_call_operand.vmem [shape: f32[4,1,32], index: 4, kind: input, shape index: {}]   ;;  %s3286_s5 = inlined_call_operand.hbm [shape: f32[4,8,32], index: 5, kind: output, shape index: {}]  }
   0x1   :  { %3300 = sst [smem:[#allocation18_spill]] %s3282_s1 }
   0x2   :  { %10 = vsyncpa [#allocation3], 0 }
   0x3   :  { %12 = vsyncpa [#allocation3 + $0x1], 0 }
   0x4   :  { %13 = vsyncpa [#allocation6], 0 }
   0x5   :  { %15 = vsyncpa [#allocation6 + $0x1], 0 }
   0x6   :  { %16 = vsyncpa [#allocation9], 0 }
   0x7   :  { %17 = vsyncpa [#allocation4], 0 }
   0x8   :  { %19 = vsyncpa [#allocation4 + $0x1], 0  ;;  %s2802_s18 = smov 0   ;;  %s2804_s19 = smov 0  }
   0x9   :  { %s2806_s20 = smov 0   ;;  %s2808_s21 = smov 0  }
   0xa LB: > { %3301 = sst [smem:[#allocation15_spill]] %s2750_s20  ;;  %s2823_s22 = sadd.s32 1, %s2754_s21   ;;  %s2754_s21 = sphi %s2808_s21, %s3323_s21   ;;  %s2750_s20 = sphi %s2806_s20, %s3325_s20   ;;  %s2746_s19 = sphi %s2804_s19, %s3327_s19   ;;  %s2742_s18 = sphi %s2802_s18, %s3326_s18  }
   0xb   : > { %3302 = sst [smem:[#allocation16_spill]] %s2823_s22  ;;  %s32_s23 = sadd.s32 1, %s2750_s20 }
   0xc   : > { %s29_s24 = ssub.s32 %s2754_s21, %s2823_s22  ;;  %p3287_p0 = scmp.ne.s32.totalorder %s2750_s20, %s2746_s19 }
   0xd   : > { %p30_p1 = scmp.eq.s32.totalorder %s29_s24, 0  ;;  %p40_p2 = scmp.eq.s32.totalorder %s2754_s21, 0 }
   0xe   : > { %p2493_p5 = scmp.lt.s32.totalorder %s2754_s21, 2  ;;  %s205_s26 = sand.u32 1, %s2750_s20  }
   0xf   : > { %s2832_s25 = scalar_select %p30_p1, %s2750_s20, %s32_s23  }
  0x10   : > { %p41_p3 = por %p40_p2, %p3287_p0  ;;  %s2842_s27 = sshll.u32 %s205_s26, 4 }
  0x11   : > { %3303 = sst [smem:[#allocation17_spill]] %s2832_s25  ;;  %s2845_s28 = sshll.u32 %s2754_s21, 8 }
  0x12   : > { %p2847_p6 = pnand %p2493_p5, %p41_p3  ;;  %s226_s30 = sand.u32 1, %s2754_s21  }
  0x13   : > { %s3305_s1 = sld [smem:[#allocation18_spill]]  ;;  %s230_s9 = scalar_lea.vmem [#allocation5], %s2842_s27 }
  0x14   : > { %s237_s10 = sshll.u32 %s230_s9, 4  ;;  %s2861_s11 = scalar_lea.sflag [#allocation6], %s226_s30  ;;  %s2859_s10 = int_to_ptr.vmem [resolvable:$true] %s237_s10 }
  0x15   : > { %p2867_p8 = pneg %p2847_p6 }
  0x19   : > { %s2856_s8 = scalar_lea.hbm %s3305_s1, %s2845_s28  ;;  %s2577_s16 = scalar_lea.hbm %s3305_s1, 512 }
  0x1a   : > { %s2572_s12 = scalar_lea.hbm %s2856_s8, 256  ;;  %p2578_p11 = scmp.lt.s32.totalorder %s2856_s8, %s3305_s1 }
  0x1b   : > { %p2573_p7 = scmp.ne.s32.totalorder %s2856_s8, %s2572_s12  ;;  %p2579_p12 = scmp.lt.s32.totalorder %s2577_s16, %s2572_s12 }
  0x1d   : > { %p2575_p9 = pnand %p2867_p8, %p2573_p7  ;;  %p2580_p13 = por %p2579_p12, %p2578_p11 }
  0x1f   : > { %p2576_p10 = pneg %p2575_p9 }
  0x21   : > { %p2581_p1 = pnand %p2580_p13, %p2576_p10 }
  0x23   : > { %2584 = shalt.err (!%p2581_p1)
}
  0x24   : > { %s2585_s24 = scalar_lea.vmem %s2859_s10, 256  ;;  %s2756_s30 = smov [#allocation5]  }
  0x25   : > { %p2586_p2 = scmp.ne.s32.totalorder %s2859_s10, %s2585_s24  ;;  %s2590_s6 = sshll.u32 %s2756_s30, 4  ;;  %s2591_s6 = int_to_ptr.vmem [resolvable:$false] %s2590_s6 }
  0x26   : > { %s2592_s7 = scalar_lea.vmem %s2591_s6, 512  ;;  %p2593_p7 = scmp.lt.s32.totalorder %s2859_s10, %s2591_s6 }
  0x27   : > { %p2588_p3 = pnand %p2586_p2, %p2867_p8  ;;  %p2594_p9 = scmp.lt.s32.totalorder %s2592_s7, %s2585_s24 }
  0x29   : > { %p2589_p5 = pneg %p2588_p3  ;;  %p2595_p4 = por %p2594_p9, %p2593_p7 }
  0x2b   : > { %p2596_p0 = pnand %p2595_p4, %p2589_p5 }
  0x2d   : > { %2599 = shalt.err (!%p2596_p0)
}
  0x2e   : > { %s3288_s9 = smov 128   ;;  %s3290_s12 = smov 8  }
  0x2f   : > { %2484 = dma.hbm_to_vmem [thread:$0]  (!%p2847_p6), %s2856_s8, 256, %s2859_s10, %s2861_s11, %s3288_s9, %s3288_s9, %s3290_s12  }
  0x30   : > { %s2894_s14 = sadd.s32 4294967295, %s2754_s21   ;;  %s2215_s15 = sadd.s32 4294967294, %s2754_s21  }
  0x31   : > { %p45_p0 = scmp.ne.s32.totalorder %s2746_s19, %s2742_s18  ;;  %p3294_p4 = scmp.eq.s32.totalorder %s2894_s14, 0 }
  0x32   : > { %p163_p10 = scmp.eq.s32.totalorder %s2894_s14, 1  ;;  %p169_p11 = scmp.eq.s32.totalorder %s2215_s15, 1 }
  0x33   : > { %p2903_p12 = por %p3294_p4, %p45_p0  ;;  %p2216_p13 = scmp.ge.s32.totalorder %s2754_s21, 1 }
  0x34   : > { %p3308_p1 = scmp.ne.s32.totalorder %s2750_s20, %s2746_s19  ;;  %p2915_p3 = por %p169_p11, %p45_p0 }
  0x35   : > { %s3307_s16 = scalar_select %p2903_p12, 1, 0 }
  0x36   : > { %p2911_p2 = por %p163_p10, %p3308_p1  ;;  %p176_p5 = scmp.lt.s32.totalorder %s2754_s21, 3 }
  0x37   : > { %s3310_s10 = scalar_select %p2915_p3, 1, 0 }
  0x38   : > { %s3309_s8 = scalar_select %p2911_p2, 1, 0 }
  0x39   : > { %p2920_p7 = pnand %p2216_p13, %p176_p5  ;;  %s2759_s23 = smov [#allocation8]  }
  0x3a   : > { %s188_s24 = sshll.u32 %s2759_s23, 4  ;;  %s2932_s7 = scalar_lea.hbm %s3281_s0, %s2845_s28  ;;  %s2924_s24 = int_to_ptr.vmem [resolvable:$true] %s188_s24 }
  0x3b   : > { %s3311_s17 = scalar_select %p2920_p7, 1, 0 }
  0x3c   : > { %p2474_p9 = pneg %p2920_p7  ;;  %s209_s15 = scalar_lea.vmem [#allocation2], %s2842_s27 }
  0x3d   : > { %s216_s9 = sshll.u32 %s209_s15, 4  ;;  %s206_s23 = scalar_lea.sflag [#allocation3], %s205_s26  ;;  %s2941_s9 = int_to_ptr.vmem [resolvable:$true] %s216_s9 }
  0x3e   : > { %p2937_p0 = pnand %p2474_p9, %p3294_p4  ;;  %s2600_s1 = scalar_lea.hbm %s2932_s7, 256 }
  0x3f   : > { %p2601_p10 = scmp.ne.s32.totalorder %s2932_s7, %s2600_s1  ;;  %s2605_s25 = scalar_lea.hbm %s3281_s0, 512 }
  0x40   : > { %s3312_s12 = scalar_select %p2937_p0, 1, 0 }
  0x41   : > { %p2603_p11 = pnand %p2601_p10, %p2867_p8  ;;  %p2606_p1 = scmp.lt.s32.totalorder %s2932_s7, %s3281_s0 }
  0x42   : > { %p2607_p5 = scmp.lt.s32.totalorder %s2605_s25, %s2600_s1 }
  0x43   : > { %p2604_p13 = pneg %p2603_p11 }
  0x44   : > { %p2608_p9 = por %p2607_p5, %p2606_p1 }
  0x46   : > { %p2609_p4 = pnand %p2608_p9, %p2604_p13 }
  0x48   : > { %2612 = shalt.err (!%p2609_p4)
}
  0x49   : > { %s2613_s26 = scalar_lea.vmem %s2941_s9, 256  ;;  %s2760_s20 = smov [#allocation2]  }
  0x4a   : > { %p2614_p3 = scmp.ne.s32.totalorder %s2941_s9, %s2613_s26  ;;  %s2618_s30 = sshll.u32 %s2760_s20, 4  ;;  %s2619_s30 = int_to_ptr.vmem [resolvable:$false] %s2618_s30 }
  0x4b   : > { %s2620_s6 = scalar_lea.vmem %s2619_s30, 512  ;;  %p2621_p2 = scmp.lt.s32.totalorder %s2941_s9, %s2619_s30 }
  0x4c   : > { %p2616_p10 = pnand %p2614_p3, %p2867_p8  ;;  %p2622_p12 = scmp.lt.s32.totalorder %s2620_s6, %s2613_s26 }
  0x4e   : > { %p2617_p11 = pneg %p2616_p10  ;;  %p2623_p7 = por %p2622_p12, %p2621_p2 }
  0x50   : > { %p2624_p0 = pnand %p2623_p7, %p2617_p11 }
  0x52   : > { %2627 = shalt.err (!%p2624_p0)
}
  0x53   : > { %s3313_s1 = smov 8   ;;  %s3314_s22 = smov 128  }
  0x54   : > { %2481 = dma.hbm_to_vmem [thread:$0]  (!%p2847_p6), %s2932_s7, 256, %s2941_s9, %s206_s23, %s3314_s22, %s3314_s22, %s3313_s1  }
  0x55   : > { %s2972_s15 = scalar_lea.hbm %s3283_s2, %s2845_s28  ;;  %p3315_p4 = scmp.ne.s32.totalorder %s3312_s12, 0 }
  0x56   : > { %s2639_s26 = scalar_lea.vmem %s2924_s24, 2048  ;;  %p2647_p0 = scmp.lt.s32.totalorder %s2924_s24, %s2924_s24 }
  0x57   : > { %p2630_p12 = pneg %p3315_p4  ;;  %p2640_p2 = scmp.ne.s32.totalorder %s2924_s24, %s2639_s26 }
  0x58   : > { %p2648_p13 = scmp.lt.s32.totalorder %s2639_s26, %s2639_s26 }
  0x59   : > { %p2642_p3 = pnand %p2640_p2, %p2630_p12 }
  0x5a   : > { %p2649_p1 = por %p2648_p13, %p2647_p0 }
  0x5b   : > { %p2643_p7 = pneg %p2642_p3 }
  0x5d   : > { %p2650_p5 = pnand %p2649_p1, %p2643_p7 }
  0x5f   : > { %2653 = shalt.err (!%p2650_p5)
}
  0x60   : > { %2477 = dma.hbm_to_vmem [thread:$0]  (!%p3315_p4), %s3284_s3, 2048, %s2924_s24, [#allocation9], %s3314_s22, %s3314_s22, %s3313_s1  }
  0x61   : > { %s251_s7 = scalar_lea.vmem [#allocation7], %s2842_s27  ;;  %s2654_s30 = scalar_lea.hbm %s2972_s15, 256 }
  0x62   : > { %s258_s23 = sshll.u32 %s251_s7, 4  ;;  %p2655_p9 = scmp.ne.s32.totalorder %s2972_s15, %s2654_s30  ;;  %s259_s23 = int_to_ptr.vmem [resolvable:$true] %s258_s23 }
  0x63   : > { %s2659_s20 = scalar_lea.hbm %s3283_s2, 512  ;;  %p2660_p12 = scmp.lt.s32.totalorder %s2972_s15, %s3283_s2 }
  0x64   : > { %p2657_p10 = pnand %p2655_p9, %p2867_p8  ;;  %p2661_p2 = scmp.lt.s32.totalorder %s2659_s20, %s2654_s30 }
  0x66   : > { %p2658_p11 = pneg %p2657_p10  ;;  %p2662_p3 = por %p2661_p2, %p2660_p12 }
  0x68   : > { %p2663_p7 = pnand %p2662_p3, %p2658_p11 }
  0x6a   : > { %2666 = shalt.err (!%p2663_p7)
}
  0x6b   : > { %s2667_s27 = scalar_lea.vmem %s259_s23, 256  ;;  %s2761_s24 = smov [#allocation7]  }
  0x6c   : > { %p2668_p4 = scmp.ne.s32.totalorder %s259_s23, %s2667_s27  ;;  %s2672_s28 = sshll.u32 %s2761_s24, 4  ;;  %s2673_s28 = int_to_ptr.vmem [resolvable:$false] %s2672_s28 }
  0x6d   : > { %s2674_s9 = scalar_lea.vmem %s2673_s28, 512  ;;  %p2675_p1 = scmp.lt.s32.totalorder %s259_s23, %s2673_s28 }
  0x6e   : > { %p2670_p0 = pnand %p2668_p4, %p2867_p8  ;;  %p2676_p5 = scmp.lt.s32.totalorder %s2674_s9, %s2667_s27 }
  0x70   : > { %p2671_p13 = pneg %p2670_p0  ;;  %p2677_p9 = por %p2676_p5, %p2675_p1 }
  0x72   : > { %p2678_p10 = pnand %p2677_p9, %p2671_p13 }
  0x74   : > { %2681 = shalt.err (!%p2678_p10)
}
  0x75   : > { %2487 = dma.hbm_to_vmem [thread:$0]  (!%p2847_p6), %s2972_s15, 256, %s259_s23, %s2861_s11, %s3314_s22, %s3314_s22, %s3313_s1  }
  0x76   : > { %p3316_p8 = scmp.ne.s32.totalorder %s3311_s17, 0 }
  0x77   : > { %s3013_s13 = sand.u32 (!%p3316_p8), 1, %s2746_s19   ;;  %p3317_p11 = scmp.ne.s32.totalorder (!%p3316_p8), %s3307_s16, 0 }
  0x78   : > { %270 = sbr.rel (%p3316_p8) target bundleno = 1964 (0x7ac), region = 40  ;;  %s3016_s7 = sshll.u32 (!%p3316_p8), %s3013_s13, 4 }
  0x79   : > { %s273_s30 = scalar_lea.sflag (!%p3316_p8), [#allocation3], %s3013_s13  ;;  %s276_s29 = scalar_lea.vmem (!%p3316_p8), [#allocation2], %s3016_s7 }
  0x7d   : > { %2725 = dma.done.wait (%p3317_p11), %s273_s30, 256  }
  0x7e   : > { %2727 = vsyncadd (%p3317_p11), %s273_s30, 4294967040  ;;  %s281_s11 = sand.u32 1, %s2894_s14   ;;  %s285_s1 = scalar_lea.vmem [#allocation5], %s3016_s7 }
  0x7f   : > { %s282_s17 = scalar_lea.sflag [#allocation6], %s281_s11 }
  0x80   : > { %2729 = dma.done.wait (%p3317_p11), %s282_s17, 512  }
  0x81   : > { %2731 = vsyncadd (%p3317_p11), %s282_s17, 4294966784  ;;  %s294_s22 = scalar_lea.vmem [#allocation7], %s3016_s7  ;;  %p3318_p6 = scmp.eq.s32.totalorder %s2894_s14, 0 }
  0x83   : > { %2733 = dma.done.wait (%p3318_p6), [#allocation9], 2048   ;;  %p3319_p12 = pmov %p3318_p6 }
  0x84   : > { %v442_v0 = vld [vmem:[#allocation8 + $0x38] sm:$0xff]  ;;  %v441_v2 = vld [vmem:[#allocation8 + $0x30] sm:$0xff]  ;;  %v440_v4 = vld [vmem:[#allocation8 + $0x28] sm:$0xff]  ;;  %vm356_vm0 = vcmask 261120   ;;  %v2762_v12 = vmov 0.0   ;;  %vm2763_vm1 = vmmov 0  }
  0x85   : > { %2735 = vsyncadd (%p3319_p12), [#allocation9], 4294965248  ;;  %v348_v1 = vld [vmem:[#allocation8 + $0x18] sm:$0xff]  ;;  %2349 = vmatprep.subr.mxu1 %v442_v0  ;;  %v347_v3 = vld [vmem:[#allocation8 + $0x10] sm:$0xff]  ;;  %vm626_vm2 = vcmask 64512   ;;  %s2764_s6 = smov 120  }
  0x86   : > { %2338 = vmatprep.subr.mxu0 %v348_v1  ;;  %2350 = vmatpush3.msra.mxu1 %v442_v0  ;;  %v346_v5 = vld [vmem:[#allocation8 + $0x8] sm:$0xff]  ;;  %v439_v6 = vld [vmem:[#allocation8 + $0x20] sm:$0xff]  ;;  %s2765_s20 = smov 112   ;;  %s2766_s25 = smov 104   ;;  %v536_v23 = vld [vmem:[#allocation8 + $0x58] sm:$0xff]  ;;  %vm1300_vm3 = vcmask 130048  }
  0x87   : > { %2339 = vmatpush3.msra.mxu0 %v348_v1  ;;  %2351 = vmatprep.subr.mxu1 %v441_v2  ;;  %v345_v7 = vld [vmem:[#allocation8] sm:$0xff]  ;;  %v342_v10 = vld [vmem:[%s285_s1 + $0x8] sm:$0xff]  ;;  %v535_v24 = vld [vmem:[#allocation8 + $0x50] sm:$0xff]  ;;  %s2767_s24 = smov 8   ;;  %s2768_s28 = smov 16   ;;  %vm1302_vm4 = vcmask 195584  }
  0x88   : > { %2340 = vmatprep.subr.mxu0 %v347_v3  ;;  %2352 = vmatpush3.msra.mxu1 %v441_v2  ;;  %v341_v8 = vld [vmem:[%s285_s1] sm:$0xff]  ;;  %v340_v11 = vld [vmem:[%s276_s29 + $0x8] sm:$0xff]  ;;  %s2769_s9 = smov 24   ;;  %s334_s11 = scalar_lea.vmem [#allocation10], %s3016_s7 }
  0x89   : > { %2341 = vmatpush3.msra.mxu0 %v347_v3  ;;  %2353 = vmatprep.subr.mxu1 %v440_v4  ;;  %v339_v9 = vld [vmem:[%s276_s29] sm:$0xff]  ;;  %v534_v26 = vld [vmem:[#allocation8 + $0x48] sm:$0xff]  ;;  %s2089_s17 = sshll.u32 %s334_s11, 4  ;;  %s2281_s1 = sshll.u32 %s2894_s14, 8  ;;  %s3230_s17 = int_to_ptr.vmem [resolvable:$true] %s2089_s17 }
  0x8a   : > { %2342 = vmatprep.subr.mxu0 %v346_v5  ;;  %2354 = vmatpush3.msra.mxu1 %v440_v4  ;;  %v2238_v15 = vld [vmem:[%s3285_s4 + $0x1] ss:$0 sm:$0xff]  ;;  %v2234_v17 = vld [vmem:[%s3285_s4] ss:$0 sm:$0xff]  ;;  %v344_v28 = vld [vmem:[%s294_s22 + $0x8] sm:$0xff]  ;;  %s3236_s15 = scalar_lea.hbm %s3286_s5, %s2281_s1  ;;  %s2076_s7 = scalar_lea.sflag [#allocation4], %s3013_s13 }
  0x8b   : > { %2343 = vmatpush3.msra.mxu0 %v346_v5  ;;  %2355 = vmatprep.subr.mxu1 %v439_v6  ;;  %v343_v25 = vld [vmem:[%s294_s22] sm:$0xff]  ;;  %s2682_s23 = scalar_lea.vmem %s3230_s17, 256  ;;  %p3320_p3 = scmp.ne.s32.totalorder %s3309_s8, 0 }
  0x8c   : > { %2344 = vmatprep.subr.mxu0 %v345_v7  ;;  %2356 = vmatpush3.msra.mxu1 %v439_v6  ;;  %v533_v27 = vld [vmem:[#allocation8 + $0x40] sm:$0xff]  ;;  %p2683_p2 = scmp.ne.s32.totalorder %s3230_s17, %s2682_s23  ;;  %s2770_s14 = smov [#allocation10]  }
  0x8d   : > { %2357 = vmatprep.mubr.msk.f32.mxu1 %vm356_vm0, %v341_v8  ;;  %2345 = vmatpush3.msra.mxu0 %v345_v7  ;;  %v2242_v39 = vld [vmem:[%s3285_s4 + $0x2] ss:$0 sm:$0xff]  ;;  %s2686_s12 = sshll.u32 %s2770_s14, 4  ;;  %s2687_s12 = int_to_ptr.vmem [resolvable:$false] %s2686_s12 }
  0x8e   : > { %2346 = vmatprep.mubr.msk.f32.mxu0 %vm356_vm0, %v339_v9  ;;  %2358 = vmatmul.mubr.msk.f32.vlgmr.msra.gmra.mxu1 %vm356_vm0, %v342_v10  ;;  %p2684_p7 = pnand %p2683_p2, %p3320_p3  ;;  %p2689_p0 = scmp.lt.s32.totalorder %s3230_s17, %s2687_s12 }
  0x8f   : > { %2347 = vmatmul.mubr.msk.f32.vlgmr.msra.gmra.mxu0 %vm356_vm0, %v340_v11  ;;  %2371 = vmatprep.subr.mxu1 %v2762_v12 }
  0x90   : > { %2373 = vmatprep.mubr.msk.f32.mxu1 %vm2763_vm1, %v2762_v12  ;;  %2360 = vmatprep.subr.mxu0 %v536_v23  ;;  %p2685_p4 = pneg %p2684_p7 }
  0x91   : > { %2361 = vmatpush3.msra.mxu0 %v536_v23  ;;  %2368 = vmatprep.mubr.msk.f32.mxu0 %vm356_vm0, %v343_v25 }
  0x92   : > { %2362 = vmatprep.subr.mxu0 %v535_v24 }
  0x93   : > { %2363 = vmatpush3.msra.mxu0 %v535_v24 }
  0x94   : > { %2364 = vmatprep.subr.mxu0 %v534_v26 }
  0x95   : > { %2365 = vmatpush3.msra.mxu0 %v534_v26 }
  0x96   : > { %2366 = vmatprep.subr.mxu0 %v533_v27 }
  0x97   : > { %2367 = vmatpush3.msra.mxu0 %v533_v27 }
  0x98   : > { %2369 = vmatmul.mubr.msk.f32.vlgmr.msra.gmra.mxu0 %vm356_vm0, %v344_v28  ;;  %2391 = vmatprep.subr.mxu0 %v2762_v12 }
  0x99   : > { %2393 = vmatprep.mubr.msk.f32.mxu0 %vm2763_vm1, %v2762_v12 }
 0x14e   : > { %v2359_v13 = vpop.f32.mrf.mxu1 }
 0x14f   : > { %v2348_v14 = vpop.f32.mrf.mxu0  ;;  %v3066_v21 = vadd.f32 %v2359_v13, %v2238_v15 }
 0x150   : > { %v523_v16 = vpop.f32.mrf.mxu1  ;;  %v3070_v22 = vadd.f32 %v2348_v14, %v2234_v17 }
 0x151   : > { %v524_v18 = vadd.f32 %v2238_v15, %v523_v16  ;;  %v429_v19 = vpop.f32.mrf.mxu0 }
 0x152   : > { %v430_v20 = vadd.f32 %v2234_v17, %v429_v19 }
 0x153   : > { %790 = vrot.lane.b32.xlu1 %v524_v18, %s2764_s6  ;;  %2372 = vmatpush3.xpose.msk.msra.mxu1 %vm626_vm2, %v524_v18 }
 0x154   : > { %2376 = vmatprep.subr.mxu1 %v2762_v12 }
 0x156   : > { %2374 = vmatmul.mubr.msk.f32.vlgmr.msra.gmra.mxu1 %vm626_vm2, %v430_v20 }
 0x157   : > { %788 = vrot.lane.b32.xlu1 %v430_v20, %s2764_s6  ;;  %2378 = vmatprep.mubr.msk.f32.mxu1 %vm2763_vm1, %v2762_v12 }
 0x158   : > { %v2370_v38 = vpop.f32.mrf.mxu0 }
 0x159   : > { %v3092_v40 = vadd.f32 %v2370_v38, %v2242_v39 }
 0x15a   : > { %v617_v41 = vpop.f32.mrf.mxu0 }
 0x15b   : > { %955 = vrot.lane.b32.xlu1 %v430_v20, %s2765_s20  ;;  %v3094_v42 = vadd.f32 %v2242_v39, %v617_v41 }
 0x15d   : > { %2377 = vmatpush3.msra.mxu1 %v3094_v42 }
 0x15e   : > { %2381 = vmatprep.subr.mxu1 %v2762_v12 }
 0x15f   : > { %1123 = vrot.lane.b32.xlu1 %v524_v18, %s2766_s25 }
 0x163   : > { %1121 = vrot.lane.b32.xlu1 %v430_v20, %s2766_s25 }
 0x167   : > { %1467 = vrot.lane.b32.xlu1 %v3066_v21, %s2764_s6 }
 0x16b   : > { %1465 = vrot.lane.b32.xlu1 %v3070_v22, %s2764_s6 }
 0x16f   : > { %1634 = vrot.lane.b32.xlu1 %v3066_v21, %s2765_s20 }
 0x173   : > { %1800 = vrot.lane.b32.xlu1 %v3066_v21, %s2766_s25 }
 0x1c5   : > { %v791_v43 = vpop.permute.xlu1 %790 }
 0x1c9   : > { %v789_v44 = vpop.permute.xlu1 %788 }
 0x1cd   : > { %v956_v45 = vpop.permute.xlu1 %955 }
 0x1d1   : > { %v1124_v46 = vpop.permute.xlu1 %1123 }
 0x1d5   : > { %v1122_v47 = vpop.permute.xlu1 %1121 }
 0x1d9   : > { %v1468_v50 = vpop.permute.xlu1 %1467 }
 0x1dd   : > { %v1466_v51 = vpop.permute.xlu1 %1465 }
 0x1e1   : > { %v1635_v54 = vpop.permute.xlu1 %1634 }
 0x1e5   : > { %v1801_v56 = vpop.permute.xlu1 %1800 }
 0x216   : > { %v699_v29 = vpop.f32.mrf.mxu1 }
 0x217   : > { %v703_v30 = vmul.f32 0.35355338, %v699_v29 }
 0x218   : > { %v2375_v31 = vpop.f32.mrf.mxu1 }
 0x219   : > { %v704_v32 = vsel %vm626_vm2, %v703_v30, -inf }
 0x21a   : > { %705 = vmax.xlane.f32.xlu0 %v704_v32 }
 0x2a3   : > { %v706_v33 = vpop.xlane.xlu0 %705 }
 0x2a4   : > { %v707_v34 = vsub.f32 %v703_v30, %v706_v33 }
 0x2a6   : > { %v708_v35 = vmul.f32 1.442695, %v707_v34 }
 0x2a8   : > { %2540 = vpow2.f32 %v708_v35 }
 0x2b5   : > { %v2541_v36 = vpop.eup %2540 }
 0x2b6   : > { %v710_v37 = vsel %vm626_vm2, %v2541_v36, 0.0 }
 0x2b7   : > { %711 = vadd.xlane.f32.xlu0 %v710_v37 }
 0x2cd   : > { %957 = vrot.lane.b32.xlu0 %v524_v18, %s2765_s20 }
 0x2d1   : > { %1632 = vrot.lane.b32.xlu0 %v3070_v22, %s2765_s20 }
 0x2d5   : > { %1798 = vrot.lane.b32.xlu0 %v3070_v22, %s2766_s25 }
 0x340   : > { %v712_v48 = vpop.xlane.xlu0 %711 }
 0x341   : > { %2542 = vrcp.f32 %v712_v48 }
 0x344   : > { %v958_v49 = vpop.permute.xlu0 %957 }
 0x345   : > { %2392 = vmatpush3.xpose.msk.msra.mxu0 %vm626_vm2, %v958_v49 }
 0x346   : > { %2401 = vmatprep.subr.mxu0 %v2762_v12 }
 0x348   : > { %2394 = vmatmul.mubr.msk.f32.vlgmr.msra.gmra.mxu0 %vm626_vm2, %v956_v45  ;;  %v1633_v55 = vpop.permute.xlu0 %1632 }
 0x349   : > { %2402 = vmatpush3.xpose.msk.msra.mxu0 %vm626_vm2, %v1124_v46  ;;  %2403 = vmatprep.mubr.msk.f32.mxu0 %vm2763_vm1, %v2762_v12 }
 0x34a   : > { %2411 = vmatprep.subr.mxu0 %v2762_v12 }
 0x34c   : > { %2404 = vmatmul.mubr.msk.f32.vlgmr.msra.gmra.mxu0 %vm626_vm2, %v1122_v47  ;;  %v1799_v57 = vpop.permute.xlu0 %1798 }
 0x34d   : > { %2412 = vmatpush3.xpose.msk.msra.mxu0 %vm626_vm2, %v3066_v21  ;;  %2413 = vmatprep.mubr.msk.f32.mxu0 %vm2763_vm1, %v2762_v12 }
 0x34e   : > { %v2543_v52 = vpop.eup %2542  ;;  %2421 = vmatprep.subr.mxu0 %v2762_v12 }
 0x34f   : > { %v714_v53 = vmul.f32 %v2543_v52, %v2541_v36 }
 0x350   : > { %2414 = vmatmul.mubr.msk.f32.vlgmr.msra.gmra.mxu0 %vm626_vm2, %v3070_v22 }
 0x351   : > { %2379 = vmatmul.mubr.msk.f32.vlgmr.msra.gmra.mxu1 %vm626_vm2, %v714_v53  ;;  %2422 = vmatpush3.xpose.msk.msra.mxu0 %vm626_vm2, %v1468_v50 }
 0x352   : > { %2382 = vmatpush3.xpose.msk.msra.mxu1 %vm626_vm2, %v791_v43  ;;  %2423 = vmatprep.mubr.msk.f32.mxu0 %vm2763_vm1, %v2762_v12 }
 0x353   : > { %2383 = vmatprep.mubr.msk.f32.mxu1 %vm2763_vm1, %v2762_v12  ;;  %2431 = vmatprep.subr.mxu0 %v2762_v12 }
 0x354   : > { %2424 = vmatmul.mubr.msk.f32.vlgmr.msra.gmra.mxu0 %vm626_vm2, %v1466_v51  ;;  %2386 = vmatprep.subr.mxu1 %v2762_v12 }
 0x355   : > { %2384 = vmatmul.mubr.msk.f32.vlgmr.msra.gmra.mxu1 %vm626_vm2, %v789_v44  ;;  %2432 = vmatpush3.xpose.msk.msra.mxu0 %vm626_vm2, %v1635_v54 }
 0x356   : > { %2433 = vmatprep.mubr.msk.f32.mxu0 %vm2763_vm1, %v2762_v12  ;;  %2441 = vmatprep.subr.mxu0 %v2762_v12 }
 0x357   : > { %2388 = vmatprep.mubr.msk.f32.mxu1 %vm2763_vm1, %v2762_v12 }
 0x358   : > { %2434 = vmatmul.mubr.msk.f32.vlgmr.msra.gmra.mxu0 %vm626_vm2, %v1633_v55 }
 0x359   : > { %2442 = vmatpush3.xpose.msk.msra.mxu0 %vm626_vm2, %v1801_v56  ;;  %2443 = vmatprep.mubr.msk.f32.mxu0 %vm2763_vm1, %v2762_v12 }
 0x35c   : > { %2444 = vmatmul.mubr.msk.f32.vlgmr.msra.gmra.mxu0 %vm626_vm2, %v1799_v57 }
 0x408   : > { %v1029_v58 = vpop.f32.mrf.mxu0 }
 0x409   : > { %v1033_v59 = vmul.f32 0.35355338, %v1029_v58 }
 0x40a   : > { %v2395_v60 = vpop.f32.mrf.mxu0 }
 0x40b   : > { %v1034_v61 = vsel %vm626_vm2, %v1033_v59, -inf }
 0x40c   : > { %1035 = vmax.xlane.f32.xlu0 %v1034_v61  ;;  %v1195_v62 = vpop.f32.mrf.mxu0 }
 0x40d   : > { %v1199_v63 = vmul.f32 0.35355338, %v1195_v62 }
 0x40e   : > { %v2405_v0 = vpop.f32.mrf.mxu0 }
 0x40f   : > { %v1200_v1 = vsel %vm626_vm2, %v1199_v63, -inf }
 0x410   : > { %1201 = vmax.xlane.f32.xlu0 %v1200_v1  ;;  %v1376_v2 = vpop.f32.mrf.mxu0 }
 0x411   : > { %v3142_v3 = vpop.f32.mrf.mxu1  ;;  %v1380_v14 = vmul.f32 0.35355338, %v1376_v2 }
 0x412   : > { %v2415_v4 = vpop.f32.mrf.mxu0 }
 0x413   : > { %v2380_v5 = vpop.f32.mrf.mxu1  ;;  %v1381_v20 = vsel %vm626_vm2, %v1380_v14, -inf }
 0x414   : > { %v1539_v6 = vpop.f32.mrf.mxu0 }
 0x415   : > { %v1543_v7 = vmul.f32 0.35355338, %v1539_v6  ;;  %v862_v8 = vpop.f32.mrf.mxu1 }
 0x416   : > { %v3144_v9 = vmul.f32 0.35355338, %v862_v8  ;;  %v2425_v10 = vpop.f32.mrf.mxu0 }
 0x417   : > { %v2385_v11 = vpop.f32.mrf.mxu1  ;;  %v1544_v13 = vsel %vm626_vm2, %v1543_v7, -inf }
 0x418   : > { %1545 = vmax.xlane.f32.xlu0 %v1544_v13  ;;  %v1706_v15 = vpop.f32.mrf.mxu0  ;;  %v867_v16 = vsel %vm626_vm2, %v3144_v9, -inf }
 0x419   : > { %868 = vmax.xlane.f32.xlu1 %v867_v16  ;;  %v1710_v18 = vmul.f32 0.35355338, %v1706_v15 }
 0x41a   : > { %v2435_v17 = vpop.f32.mrf.mxu0 }
 0x41b   : > { %v1711_v24 = vsel %vm626_vm2, %v1710_v18, -inf }
 0x41c   : > { %v1872_v19 = vpop.f32.mrf.mxu0 }
 0x41d   : > { %v1876_v21 = vmul.f32 0.35355338, %v1872_v19  ;;  %1382 = vmax.xlane.f32.xlu1 %v1381_v20 }
 0x41e   : > { %v2445_v22 = vpop.f32.mrf.mxu0 }
 0x41f   : > { %v1877_v23 = vsel %vm626_vm2, %v1876_v21, -inf }
 0x420   : > { %1878 = vmax.xlane.f32.xlu0 %v1877_v23 }
 0x421   : > { %1712 = vmax.xlane.f32.xlu1 %v1711_v24 }
 0x495   : > { %v1036_v25 = vpop.xlane.xlu0 %1035 }
 0x496   : > { %v1037_v26 = vsub.f32 %v1033_v59, %v1036_v25 }
 0x498   : > { %v1038_v27 = vmul.f32 1.442695, %v1037_v26 }
 0x499   : > { %v1202_v28 = vpop.xlane.xlu0 %1201 }
 0x49a   : > { %2544 = vpow2.f32 %v1038_v27  ;;  %v1203_v29 = vsub.f32 %v1199_v63, %v1202_v28  ;;  %v1983_v28 = vld [vmem:[#allocation8 + $0x78] sm:$0xff] }
 0x49b   : > { %2451 = vmatprep.subr.mxu0 %v1983_v28 }
 0x49c   : > { %v1204_v30 = vmul.f32 1.442695, %v1203_v29  ;;  %v1982_v29 = vld [vmem:[#allocation8 + $0x70] sm:$0xff]  ;;  %2452 = vmatpush3.msra.mxu0 %v1983_v28 }
 0x49d   : > { %2453 = vmatprep.subr.mxu0 %v1982_v29 }
 0x49e   : > { %2546 = vpow2.f32 %v1204_v30  ;;  %2454 = vmatpush3.msra.mxu0 %v1982_v29 }
 0x4a1   : > { %v1546_v31 = vpop.xlane.xlu0 %1545 }
 0x4a2   : > { %v1547_v32 = vsub.f32 %v1543_v7, %v1546_v31  ;;  %v869_v33 = vpop.xlane.xlu1 %868 }
 0x4a3   : > { %v870_v58 = vsub.f32 %v3144_v9, %v869_v33 }
 0x4a4   : > { %v1548_v34 = vmul.f32 1.442695, %v1547_v32  ;;  %v1980_v32 = vld [vmem:[#allocation8 + $0x60] sm:$0xff] }
 0x4a5   : > { %v871_v59 = vmul.f32 1.442695, %v870_v58 }
 0x4a6   : > { %2548 = vpow2.f32 %v1548_v34  ;;  %v1383_v35 = vpop.xlane.xlu1 %1382 }
 0x4a7   : > { %v3152_v36 = vpop.eup %2544  ;;  %v1384_v37 = vsub.f32 %v1380_v14, %v1383_v35 }
 0x4a8   : > { %v1040_v38 = vsel %vm626_vm2, %v3152_v36, 0.0 }
 0x4a9   : > { %v1385_v39 = vmul.f32 1.442695, %v1384_v37  ;;  %1041 = vadd.xlane.f32.xlu0 %v1040_v38  ;;  %v1879_v41 = vpop.xlane.xlu0 %1878 }
 0x4aa   : > { %v1880_v43 = vsub.f32 %v1876_v21, %v1879_v41  ;;  %v1713_v44 = vpop.xlane.xlu1 %1712 }
 0x4ab   : > { %v3156_v45 = vpop.eup %2546  ;;  %2550 = vpow2.f32 %v1385_v39  ;;  %v1714_v46 = vsub.f32 %v1710_v18, %v1713_v44 }
 0x4ac   : > { %v1881_v47 = vmul.f32 1.442695, %v1880_v43  ;;  %v1206_v48 = vsel %vm626_vm2, %v3156_v45, 0.0 }
 0x4ad   : > { %v1715_v49 = vmul.f32 1.442695, %v1714_v46  ;;  %1207 = vadd.xlane.f32.xlu1 %v1206_v48 }
 0x4ae   : > { %2552 = vpow2.f32 %v1881_v47 }
 0x4af   : > { %2554 = vpow2.f32 %v1715_v49 }
 0x4b0   : > { %2556 = vpow2.f32 %v871_v59 }
 0x4b3   : > { %v3160_v50 = vpop.eup %2548 }
 0x4b4   : > { %v1550_v51 = vsel %vm626_vm2, %v3160_v50, 0.0 }
 0x4b5   : > { %1551 = vadd.xlane.f32.xlu1 %v1550_v51 }
 0x4b8   : > { %v2551_v52 = vpop.eup %2550 }
 0x4b9   : > { %v1387_v53 = vsel %vm626_vm2, %v2551_v52, 0.0 }
 0x4ba   : > { %1388 = vadd.xlane.f32.xlu0 %v1387_v53 }
 0x4bb   : > { %v3165_v54 = vpop.eup %2552 }
 0x4bc   : > { %v3167_v55 = vpop.eup %2554  ;;  %v1883_v56 = vsel %vm626_vm2, %v3165_v54, 0.0 }
 0x4bd   : > { %1884 = vadd.xlane.f32.xlu1 %v1883_v56  ;;  %v1717_v57 = vsel %vm626_vm2, %v3167_v55, 0.0  ;;  %v2557_v60 = vpop.eup %2556 }
 0x4be   : > { %1718 = vadd.xlane.f32.xlu0 %v1717_v57  ;;  %v873_v61 = vsel %vm626_vm2, %v2557_v60, 0.0 }
 0x4ce   : > { %1045 = vrot.lane.b32.xlu1 %v3094_v42, %s2765_s20 }
 0x4d4   : > { %879 = vrot.lane.b32.xlu0 %v3094_v42, %s2764_s6 }
 0x4d8   : > { %1556 = vrot.lane.b32.xlu0 %v3092_v40, %s2764_s6  ;;  %s2688_s6 = scalar_lea.vmem %s2687_s12, 512 }
 0x4d9   : > { %p2690_p13 = scmp.lt.s32.totalorder %s2688_s6, %s2682_s23 }
 0x4db   : > { %p2691_p1 = por %p2690_p13, %p2689_p0 }
 0x4dc   : > { %1888 = vrot.lane.b32.xlu0 %v3092_v40, %s2766_s25 }
 0x4dd   : > { %p2692_p5 = pnand %p2691_p1, %p2685_p4 }
 0x4f2   : > { %874 = vadd.xlane.f32.xlu1 %v873_v61 }
 0x503   : > { %1211 = vrot.lane.b32.xlu1 %v3094_v42, %s2766_s25 }
 0x507   : > { %1722 = vrot.lane.b32.xlu1 %v3092_v40, %s2765_s20 }
 0x532   : > { %v1042_v62 = vpop.xlane.xlu0 %1041 }
 0x536   : > { %v1208_v2 = vpop.xlane.xlu1 %1207 }
 0x53e   : > { %v1552_v4 = vpop.xlane.xlu1 %1551 }
 0x543   : > { %v1389_v63 = vpop.xlane.xlu0 %1388 }
 0x546   : > { %v1885_v5 = vpop.xlane.xlu1 %1884 }
 0x547   : > { %v1719_v0 = vpop.xlane.xlu0 %1718 }
 0x54a   : > { %v1046_v6 = vpop.permute.xlu1 %1045 }
 0x54b   : > { %v880_v1 = vpop.permute.xlu0 %879 }
 0x54c   : > { %2387 = vmatpush3.msra.mxu1 %v880_v1 }
 0x54d   : > { %2396 = vmatprep.subr.mxu1 %v2762_v12 }
 0x54f   : > { %v1557_v18 = vpop.permute.xlu0 %1556 }
 0x553   : > { %v1889_v23 = vpop.permute.xlu0 %1888 }
 0x57b   : > { %v875_v7 = vpop.xlane.xlu1 %874 }
 0x57c   : > { %2558 = vrcp.f32 %v875_v7 }
 0x57d   : > { %2560 = vrcp.f32 %v1042_v62 }
 0x57e   : > { %2562 = vrcp.f32 %v1208_v2 }
 0x57f   : > { %2564 = vrcp.f32 %v1389_v63  ;;  %v1212_v13 = vpop.permute.xlu1 %1211 }
 0x580   : > { %2566 = vrcp.f32 %v1552_v4 }
 0x581   : > { %2568 = vrcp.f32 %v1719_v0 }
 0x582   : > { %2570 = vrcp.f32 %v1885_v5 }
 0x589   : > { %v2559_v42 = vpop.eup %2558 }
 0x58a   : > { %v877_v8 = vmul.f32 %v2559_v42, %v2557_v60  ;;  %v2561_v9 = vpop.eup %2560 }
 0x58b   : > { %v1044_v10 = vmul.f32 %v2561_v9, %v3152_v36  ;;  %v2563_v11 = vpop.eup %2562 }
 0x58c   : > { %2389 = vmatmul.mubr.msk.f32.vlgmr.msra.gmra.mxu1 %vm626_vm2, %v877_v8  ;;  %v1210_v14 = vmul.f32 %v2563_v11, %v3156_v45  ;;  %v2565_v15 = vpop.eup %2564 }
 0x58d   : > { %2397 = vmatpush3.msra.mxu1 %v1046_v6  ;;  %2398 = vmatprep.mubr.msk.f32.mxu1 %vm2763_vm1, %v2762_v12  ;;  %v1391_v16 = vmul.f32 %v2565_v15, %v2551_v52  ;;  %v2567_v17 = vpop.eup %2566 }
 0x58e   : > { %2406 = vmatprep.subr.mxu1 %v2762_v12  ;;  %v1554_v19 = vmul.f32 %v2567_v17, %v3160_v50  ;;  %v2569_v20 = vpop.eup %2568 }
 0x58f   : > { %v1721_v21 = vmul.f32 %v2569_v20, %v3167_v55  ;;  %v2571_v22 = vpop.eup %2570 }
 0x590   : > { %2399 = vmatmul.mubr.msk.f32.vlgmr.msra.gmra.mxu1 %vm626_vm2, %v1044_v10  ;;  %v1887_v24 = vmul.f32 %v2571_v22, %v3165_v54 }
 0x591   : > { %2407 = vmatpush3.msra.mxu1 %v1212_v13  ;;  %2408 = vmatprep.mubr.msk.f32.mxu1 %vm2763_vm1, %v2762_v12 }
 0x592   : > { %2416 = vmatprep.subr.mxu1 %v2762_v12 }
 0x594   : > { %2409 = vmatmul.mubr.msk.f32.vlgmr.msra.gmra.mxu1 %vm626_vm2, %v1210_v14 }
 0x595   : > { %2417 = vmatpush3.msra.mxu1 %v3092_v40  ;;  %2418 = vmatprep.mubr.msk.f32.mxu1 %vm2763_vm1, %v2762_v12  ;;  %v1723_v40 = vpop.permute.xlu1 %1722 }
 0x596   : > { %2426 = vmatprep.subr.mxu1 %v2762_v12 }
 0x598   : > { %2419 = vmatmul.mubr.msk.f32.vlgmr.msra.gmra.mxu1 %vm626_vm2, %v1391_v16 }
 0x599   : > { %2427 = vmatpush3.msra.mxu1 %v1557_v18  ;;  %2428 = vmatprep.mubr.msk.f32.mxu1 %vm2763_vm1, %v2762_v12 }
 0x59a   : > { %2436 = vmatprep.subr.mxu1 %v2762_v12 }
 0x59c   : > { %2429 = vmatmul.mubr.msk.f32.vlgmr.msra.gmra.mxu1 %vm626_vm2, %v1554_v19 }
 0x59d   : > { %2437 = vmatpush3.msra.mxu1 %v1723_v40  ;;  %2438 = vmatprep.mubr.msk.f32.mxu1 %vm2763_vm1, %v2762_v12 }
 0x59e   : > { %2446 = vmatprep.subr.mxu1 %v2762_v12 }
 0x5a0   : > { %2439 = vmatmul.mubr.msk.f32.vlgmr.msra.gmra.mxu1 %vm626_vm2, %v1721_v21 }
 0x5a1   : > { %2447 = vmatpush3.msra.mxu1 %v1889_v23  ;;  %2448 = vmatprep.mubr.msk.f32.mxu1 %vm2763_vm1, %v2762_v12  ;;  %v1981_v12 = vld [vmem:[#allocation8 + $0x68] sm:$0xff] }
 0x5a2   : > { %2455 = vmatprep.subr.mxu0 %v1981_v12 }
 0x5a3   : > { %2456 = vmatpush3.msra.mxu0 %v1981_v12 }
 0x5a4   : > { %2449 = vmatmul.mubr.msk.f32.vlgmr.msra.gmra.mxu1 %vm626_vm2, %v1887_v24  ;;  %2457 = vmatprep.subr.mxu0 %v1980_v32 }
 0x5a5   : > { %2458 = vmatpush3.msra.mxu0 %v1980_v32 }
 0x64c   : > { %v951_v25 = vpop.f32.mrf.mxu1 }
 0x64d   : > { %1288 = vrot.lane.b32.xlu1 %v951_v25, %s2767_s24 }
 0x64e   : > { %v2390_v26 = vpop.f32.mrf.mxu1 }
 0x650   : > { %v1117_v27 = vpop.f32.mrf.mxu1 }
 0x651   : > { %1292 = vrot.lane.b32.xlu0 %v1117_v27, %s2768_s28 }
 0x652   : > { %v2400_v30 = vpop.f32.mrf.mxu1 }
 0x654   : > { %v1283_v31 = vpop.f32.mrf.mxu1 }
 0x655   : > { %1296 = vrot.lane.b32.xlu0 %v1283_v31, %s2769_s9 }
 0x656   : > { %v2410_v33 = vpop.f32.mrf.mxu1 }
 0x658   : > { %v1461_v34 = vpop.f32.mrf.mxu1 }
 0x65a   : > { %v2420_v35 = vpop.f32.mrf.mxu1 }
 0x65c   : > { %v1628_v36 = vpop.f32.mrf.mxu1 }
 0x65d   : > { %1965 = vrot.lane.b32.xlu1 %v1628_v36, %s2767_s24 }
 0x65e   : > { %v2430_v37 = vpop.f32.mrf.mxu1 }
 0x660   : > { %v1794_v38 = vpop.f32.mrf.mxu1 }
 0x661   : > { %1969 = vrot.lane.b32.xlu1 %v1794_v38, %s2768_s28 }
 0x662   : > { %v2440_v39 = vpop.f32.mrf.mxu1 }
 0x664   : > { %v1960_v41 = vpop.f32.mrf.mxu1 }
 0x665   : > { %1973 = vrot.lane.b32.xlu0 %v1960_v41, %s2769_s9 }
 0x666   : > { %v2450_v43 = vpop.f32.mrf.mxu1 }
 0x6bf   : > { %v1289_v44 = vpop.permute.xlu1 %1288 }
 0x6c0   : > { %v1299_v46 = vsel %vm626_vm2, %v3142_v3, %v1289_v44  ;;  %v2270_v3 = vld [vmem:[%s3285_s4 + $0x3] ss:$0 sm:$0xff] }
 0x6c3   : > { %v1293_v45 = vpop.permute.xlu0 %1292 }
 0x6c4   : > { %v1301_v47 = vsel %vm1300_vm3, %v1299_v46, %v1293_v45 }
 0x6c7   : > { %v1297_v48 = vpop.permute.xlu0 %1296 }
 0x6c8   : > { %v1303_v49 = vsel %vm1302_vm4, %v1301_v47, %v1297_v48 }
 0x6c9   : > { %2459 = vmatprep.mubr.msk.f32.mxu0 %vm356_vm0, %v1303_v49 }
 0x6cf   : > { %v1966_v50 = vpop.permute.xlu1 %1965 }
 0x6d0   : > { %v1976_v52 = vsel %vm626_vm2, %v1461_v34, %v1966_v50 }
 0x6d3   : > { %v1970_v51 = vpop.permute.xlu1 %1969 }
 0x6d4   : > { %v1977_v53 = vsel %vm1300_vm3, %v1976_v52, %v1970_v51 }
 0x6d7   : > { %v1974_v54 = vpop.permute.xlu0 %1973 }
 0x6d8   : > { %v1978_v55 = vsel %vm1302_vm4, %v1977_v53, %v1974_v54 }
 0x6d9   : > { %2460 = vmatmul.mubr.msk.f32.vlgmr.msra.gmra.mxu0 %vm356_vm0, %v1978_v55 }
 0x799   : > { %v2461_v56 = vpop.f32.mrf.mxu0 }
 0x79a   : > { %v2070_v57 = vadd.f32 %v2461_v56, %v2270_v3 }
 0x79b   : > { %v2064_v58 = vpop.f32.mrf.mxu0 }
 0x79c   : > { %2074 = vst.msk [vmem:[%s334_s11 + $0x8] sm:$0xff] %vm356_vm0, %v2070_v57  ;;  %v2065_v59 = vadd.f32 %v2270_v3, %v2064_v58 }
 0x79e   : > { %2073 = vst.msk [vmem:[%s334_s11] sm:$0xff] %vm356_vm0, %v2065_v59 }
 0x79f   : > { %2695 = shalt.err (!%p2692_p5)
}
 0x7a0   : > { %s2696_s20 = scalar_lea.hbm %s3236_s15, 256  ;;  %s2700_s27 = scalar_lea.hbm %s3286_s5, 512 }
 0x7a1   : > { %p2697_p9 = scmp.ne.s32.totalorder %s3236_s15, %s2696_s20  ;;  %p2701_p11 = scmp.lt.s32.totalorder %s3236_s15, %s3286_s5 }
 0x7a2   : > { %p2702_p6 = scmp.lt.s32.totalorder %s2700_s27, %s2696_s20 }
 0x7a3   : > { %p2698_p10 = pnand %p2697_p9, %p3320_p3 }
 0x7a4   : > { %p2703_p12 = por %p2702_p6, %p2701_p11 }
 0x7a5   : > { %p2699_p8 = pneg %p2698_p10 }
 0x7a7   : > { %p2704_p2 = pnand %p2703_p12, %p2699_p8 }
 0x7a9   : > { %2707 = shalt.err (!%p2704_p2)
}
 0x7aa   : > { %s2771_s30 = smov 128  }
 0x7ab   : > { %2472 = dma.vmem_to_hbm [thread:$0]  (%p3320_p3), %s3230_s17, 256, %s3236_s15, %s2076_s7, %s2771_s30, %s2771_s30, %s2767_s24  }
 0x7ac PF: > { %s2104_s29 = sand.u32 1, %s2742_s18   ;;  %p3321_p7 = scmp.ne.s32.totalorder %s3310_s10, 0 }
 0x7ad   : > { %p3322_p4 = scmp.ge.s32.totalorder %s2754_s21, 2  ;;  %s2105_s11 = scalar_lea.sflag [#allocation4], %s2104_s29 }
 0x7af   : > { %p2489_p0 = pnand %p3322_p4, %p3321_p7 }
 0x7b1   : > { %p2490_p13 = pneg %p2489_p0 }
 0x7b3   : > { %2737 = dma.done.wait (%p2490_p13), %s2105_s11, 256  }
 0x7b4   : > { %2739 = vsyncadd (%p2490_p13), %s2105_s11, 4294967040  ;;  %s3323_s21 = sld [smem:[#allocation16_spill]]  ;;  %s3326_s18 = smov %s2746_s19 }
 0x7b5   : > { %s3324_s8 = sld [smem:[#allocation15_spill]] }
 0x7b6   : > { %s3325_s20 = sld [smem:[#allocation17_spill]] }
 0x7ba   : > { %p22_p1 = scmp.ge.s32.totalorder %s3323_s21, 4  }
 0x7bb   : > { %s3327_s19 = smov %s3324_s8 }
 0x7bc   :  { %24 = sbr.rel (!%p22_p1) target bundleno = 10 (0xa), region = 119 }
 0x7c1   :  { %2110 = vsyncpa [#allocation3], 1 }
 0x7c2   :  { %2112 = vsyncpa [#allocation3 + $0x1], 1 }
 0x7c3   :  { %2113 = vsyncpa [#allocation6], 1 }
 0x7c4   :  { %2115 = vsyncpa [#allocation6 + $0x1], 1 }
 0x7c5   :  { %2116 = vsyncpa [#allocation9], 1 }
 0x7c6   :  { %2117 = vsyncpa [#allocation4], 1 }
 0x7c7   :  { %2119 = vsyncpa [#allocation4 + $0x1], 1 }

</bundles_post_ra>
